<compile_context>
chip_gen: v7x
topology: tpu7x:2x2x1
jax: 0.10.0
libtpu: 0.0.40
codegen_flags: <defaults>
</compile_context>

<pallas_src>
import math
import functools

import jax
import jax.numpy as jnp
from jax.experimental import pallas as pl
from jax.experimental.pallas import tpu as pltpu

_INV_SQRT2 = 1.0 / math.sqrt(2.0)
_LN_EPS = 1e-5


def _round_up(n, m):
    return (n + m - 1) // m * m


def _label_decoder_kernel(
    x_ref,             # (TB, Z)   input rows
    w0_ref, b0_ref,    # stem:       (Z, D) bf16, (1, D) f32
    g_ref, be_ref,     # layernorm:  (1, D) f32,  (1, D) f32
    w1_ref, b1_ref,    # net linear: (D, D) bf16, (1, D) f32
    w2t_ref, b2t_ref,  # out linear, transposed: (Lp, D) bf16, (Lp, 1) f32
    ot_ref,            # (Lp, TB)  transposed logits
):
    # stem: Linear(z_dim -> dim); bf16 operands, f32 accumulation on the MXU
    x = x_ref[...].astype(jnp.bfloat16)
    h = jnp.dot(x, w0_ref[...], preferred_element_type=jnp.float32) + b0_ref[...]

    # LayerNorm(dim), eps=1e-5: one-pass stats (E[h], E[h^2]) so the two
    # cross-lane reductions are independent; f32 math throughout.
    mu = jnp.mean(h, axis=-1, keepdims=True)
    ex2 = jnp.mean(h * h, axis=-1, keepdims=True)
    var = ex2 - mu * mu
    hn = (h - mu) * jax.lax.rsqrt(var + _LN_EPS)
    hn = hn * g_ref[...] + be_ref[...]

    # Linear(dim -> dim) + exact erf GELU (matches PyTorch's default nn.GELU)
    h2 = jnp.dot(hn.astype(jnp.bfloat16), w1_ref[...],
                 preferred_element_type=jnp.float32) + b1_ref[...]
    h2 = 0.5 * h2 * (1.0 + jax.lax.erf(h2 * _INV_SQRT2))

    # out: Linear(dim -> num_label), produced transposed as (Lp, TB) so the
    # dominant HBM write stream carries ~16 real/padded rows, not 128 lanes.
    out_t = jax.lax.dot_general(
        w2t_ref[...], h2.astype(jnp.bfloat16),
        dimension_numbers=(((1,), (1,)), ((), ())),
        preferred_element_type=jnp.float32)
    out_t = out_t + b2t_ref[...]
    ot_ref[...] = out_t.astype(ot_ref.dtype)


def prepare_params(params):
    """One-time weight prep (keep out of the per-call hot path)."""
    D, L = params["w2"].shape
    Lp = _round_up(L, 8)  # f32 sublane granule; NOT padded to 128 lanes
    w2t = jnp.pad(params["w2"], ((0, 0), (0, Lp - L))).T      # (Lp, D)
    b2t = jnp.pad(params["b2"], ((0, 0), (0, Lp - L))).T      # (Lp, 1)
    return {
        "w0": params["w0"].astype(jnp.bfloat16),
        "b0": params["b0"],
        "ln_g": params["ln_g"],
        "ln_b": params["ln_b"],
        "w1": params["w1"].astype(jnp.bfloat16),
        "b1": params["b1"],
        "w2t": w2t.astype(jnp.bfloat16),
        "b2t": b2t,
    }


@functools.partial(jax.jit, static_argnames=("num_label", "block_b", "out_dtype"))
def label_decoder_forward(x, prep, *, num_label, block_b=1024, out_dtype=jnp.float32):
    """x: (B, z_dim) float.  prep: output of prepare_params.  Returns (B, num_label)."""
    B, Z = x.shape
    Lp = prep["w2t"].shape[0]
    L = num_label

    # Batch tiling.  The transposed output block is (Lp, TB); with more than
    # one grid step TB must be a multiple of 128 (lane granule), with a single
    # step only the f32 sublane granule (8).  Force >=2 steps for B >= 256 so
    # the "parallel" batch axis can shard across both v7x TensorCores.
    if B >= 256:
        nt = max(pl.cdiv(B, block_b), 2)
        TB = _round_up(pl.cdiv(B, nt), 128)
        nt = pl.cdiv(B, TB)
    else:
        nt = 1
        TB = _round_up(B, 8)
    B_pad = nt * TB
    if B_pad != B:
        x = jnp.pad(x, ((0, B_pad - B), (0, 0)))

    w0, b0 = prep["w0"], prep["b0"]
    g, be = prep["ln_g"], prep["ln_b"]
    w1, b1 = prep["w1"], prep["b1"]
    w2t, b2t = prep["w2t"], prep["b2t"]

    def resident(a):  # fetched once, stays in VMEM across all grid steps
        return pl.BlockSpec(a.shape, lambda i: (0,) * a.ndim)

    # Conservative VMEM estimate: double-buffered x/out streams + weights.
    vmem_est = (2 * (TB * Z * x.dtype.itemsize
                     + Lp * TB * jnp.dtype(out_dtype).itemsize)
                + 2 * sum(int(a.size) * a.dtype.itemsize
                          for a in (w0, b0, g, be, w1, b1, w2t, b2t)))
    vmem_limit = None
    if vmem_est > (12 << 20):  # only needed past v5e's 16 MiB scoped default
        vmem_limit = int(min(vmem_est + (4 << 20), 96 << 20))

    out_t = pl.pallas_call(
        _label_decoder_kernel,
        out_shape=jax.ShapeDtypeStruct((Lp, B_pad), out_dtype),
        grid=(nt,),
        in_specs=[
            pl.BlockSpec((TB, Z), lambda i: (i, 0)),   # x: tiled over batch
            resident(w0), resident(b0),
            resident(g), resident(be),
            resident(w1), resident(b1),
            resident(w2t), resident(b2t),
        ],
        out_specs=pl.BlockSpec((Lp, TB), lambda i: (0, i)),
        compiler_params=pltpu.CompilerParams(
            dimension_semantics=("parallel",),          # megacore over batch
            vmem_limit_bytes=vmem_limit),
    )(x, w0, b0, g, be, w1, b1, w2t, b2t)

    # Tiny (L, B) slice + transpose back to PyTorch's (B, num_label) layout.
    return out_t[:L, :B].T


def init_params(key, num_label=10, z_dim=64, dim=128):
    """Deterministic synthetic parameters matching the PyTorch module shapes."""
    ks = jax.random.split(key, 6)

    def linear(kw, kb, fan_in, fan_out):
        bound = 1.0 / math.sqrt(fan_in)
        w = jax.random.uniform(kw, (fan_in, fan_out), jnp.float32, -bound, bound)
        b = jax.random.uniform(kb, (1, fan_out), jnp.float32, -bound, bound)
        return w, b

    w0, b0 = linear(ks[0], ks[1], z_dim, dim)      # stem
    w1, b1 = linear(ks[2], ks[3], dim, dim)        # net[1]
    w2, b2 = linear(ks[4], ks[5], dim, num_label)  # out

    return {
        "w0": w0, "b0": b0,
        "ln_g": jnp.ones((1, dim), jnp.float32),   # LayerNorm weight
        "ln_b": jnp.zeros((1, dim), jnp.float32),  # LayerNorm bias
        "w1": w1, "b1": b1,
        "w2": w2, "b2": b2,
    }


def _reference_f32(x, p):
    """Pure f32 plain-JAX reference (matches PyTorch semantics)."""
    h = x @ p["w0"] + p["b0"]
    mu = h.mean(-1, keepdims=True)
    var = ((h - mu) ** 2).mean(-1, keepdims=True)
    hn = (h - mu) / jnp.sqrt(var + _LN_EPS) * p["ln_g"] + p["ln_b"]
    h2 = hn @ p["w1"] + p["b1"]
    h2 = 0.5 * h2 * (1.0 + jax.lax.erf(h2 * _INV_SQRT2))
    return h2 @ p["w2"] + p["b2"]


def _reference_bf16(x, p):
    """Reference with the kernel's bf16-operand / f32-accumulate matmuls and stats."""
    bf = lambda a: a.astype(jnp.bfloat16)
    dot = lambda a, b: jnp.dot(bf(a), bf(b), preferred_element_type=jnp.float32)
    h = dot(x, p["w0"]) + p["b0"]
    mu = h.mean(-1, keepdims=True)
    var = (h * h).mean(-1, keepdims=True) - mu * mu
    hn = (h - mu) * jax.lax.rsqrt(var + _LN_EPS) * p["ln_g"] + p["ln_b"]
    h2 = dot(hn, p["w1"]) + p["b1"]
    h2 = 0.5 * h2 * (1.0 + jax.lax.erf(h2 * _INV_SQRT2))
    return dot(h2, p["w2"]) + p["b2"]


if __name__ == "__main__":
    key = jax.random.PRNGKey(0)
    k_x, k_p, k_x2 = jax.random.split(key, 3)

    num_label, z_dim, dim = 10, 64, 128
    params = init_params(k_p, num_label=num_label, z_dim=z_dim, dim=dim)
    prep = prepare_params(params)

    # Small batch: single-tile path.
    B = 8
    x = jax.random.normal(k_x, (B, z_dim), jnp.float32)
    out = jax.block_until_ready(label_decoder_forward(x, prep, num_label=num_label))
    assert out.shape == (B, num_label)
    assert jnp.allclose(out, _reference_bf16(x, params), atol=2e-3, rtol=2e-3), \
        "mismatch vs bf16 reference (B=8)"
    assert jnp.allclose(out, _reference_f32(x, params), atol=5e-2, rtol=5e-2), \
        "mismatch vs f32 reference (B=8)"

    # Non-aligned larger batch: multi-tile / megacore / padding path.
    B2 = 300
    x2 = jax.random.normal(k_x2, (B2, z_dim), jnp.float32)
    out2 = jax.block_until_ready(label_decoder_forward(x2, prep, num_label=num_label))
    assert out2.shape == (B2, num_label)
    assert jnp.allclose(out2, _reference_bf16(x2, params), atol=2e-3, rtol=2e-3), \
        "mismatch vs bf16 reference (B=300)"
    assert jnp.allclose(out2, _reference_f32(x2, params), atol=5e-2, rtol=5e-2), \
        "mismatch vs f32 reference (B=300)"

    print("KERNEL_OK")
</pallas_src>

<mosaic_0001>
module attributes {stable_mosaic.version = 11 : i64} {
  func.func @_label_decoder_kernel(%arg0: i32, %arg1: memref<8x64xf32, #tpu.memory_space<vmem>>, %arg2: memref<64x128xbf16, #tpu.memory_space<vmem>>, %arg3: memref<1x128xf32, #tpu.memory_space<vmem>>, %arg4: memref<1x128xf32, #tpu.memory_space<vmem>>, %arg5: memref<1x128xf32, #tpu.memory_space<vmem>>, %arg6: memref<128x128xbf16, #tpu.memory_space<vmem>>, %arg7: memref<1x128xf32, #tpu.memory_space<vmem>>, %arg8: memref<16x128xbf16, #tpu.memory_space<vmem>>, %arg9: memref<16x1xf32, #tpu.memory_space<vmem>>, %arg10: memref<16x8xf32, #tpu.memory_space<vmem>>) attributes {dimension_semantics = [#tpu.dimension_semantics<parallel>], iteration_bounds = array<i64: 1>, scalar_prefetch = 0 : i64, scratch_operands = 0 : i64, tpu.core_type = #tpu.core_type<tc>, window_params = [{transform_indices = @transform_0, window_bounds = array<i64: 8, 64>}, {pipeline_mode = #tpu.pipeline_mode<synchronous>, transform_indices = @transform_1, window_bounds = array<i64: 64, 128>}, {pipeline_mode = #tpu.pipeline_mode<synchronous>, transform_indices = @transform_2, window_bounds = array<i64: 1, 128>}, {pipeline_mode = #tpu.pipeline_mode<synchronous>, transform_indices = @transform_3, window_bounds = array<i64: 1, 128>}, {pipeline_mode = #tpu.pipeline_mode<synchronous>, transform_indices = @transform_4, window_bounds = array<i64: 1, 128>}, {pipeline_mode = #tpu.pipeline_mode<synchronous>, transform_indices = @transform_5, window_bounds = array<i64: 128, 128>}, {pipeline_mode = #tpu.pipeline_mode<synchronous>, transform_indices = @transform_6, window_bounds = array<i64: 1, 128>}, {pipeline_mode = #tpu.pipeline_mode<synchronous>, transform_indices = @transform_7, window_bounds = array<i64: 16, 128>}, {pipeline_mode = #tpu.pipeline_mode<synchronous>, transform_indices = @transform_8, window_bounds = array<i64: 16, 1>}, {transform_indices = @transform_9, window_bounds = array<i64: 16, 8>}]} {
    %c0 = arith.constant 0 : index
    %c0_0 = arith.constant 0 : index
    %0 = vector.load %arg1[%c0, %c0_0] : memref<8x64xf32, #tpu.memory_space<vmem>>, vector<8x64xf32>
    %1 = arith.truncf %0 : vector<8x64xf32> to vector<8x64xbf16>
    %c0_1 = arith.constant 0 : index
    %c0_2 = arith.constant 0 : index
    %2 = vector.load %arg2[%c0_1, %c0_2] : memref<64x128xbf16, #tpu.memory_space<vmem>>, vector<64x128xbf16>
    %cst = arith.constant dense<0.000000e+00> : vector<8x128xf32>
    %3 = tpu.matmul %1, %2, %cst {dimension_numbers = #tpu.dot_dimension_numbers<[1], [0], [0], [1], [0, 0, 1, 1], [], []>} : vector<8x64xbf16>, vector<64x128xbf16>, vector<8x128xf32> -> vector<8x128xf32>
    %c0_3 = arith.constant 0 : index
    %c0_4 = arith.constant 0 : index
    %4 = vector.load %arg3[%c0_3, %c0_4] : memref<1x128xf32, #tpu.memory_space<vmem>>, vector<1x128xf32>
    %5 = vector.broadcast %4 : vector<1x128xf32> to vector<8x128xf32>
    %6 = arith.addf %3, %5 : vector<8x128xf32>
    %cst_5 = arith.constant dense<0.000000e+00> : vector<8xf32>
    %7 = vector.multi_reduction <add>, %6, %cst_5 [1] : vector<8x128xf32> to vector<8xf32>
    %8 = vector.shape_cast %7 : vector<8xf32> to vector<8x1xf32>
    %cst_6 = arith.constant 1.280000e+02 : f32
    %9 = vector.broadcast %cst_6 : f32 to vector<8x1xf32>
    %10 = arith.divf %8, %9 : vector<8x1xf32>
    %11 = arith.mulf %6, %6 : vector<8x128xf32>
    %cst_7 = arith.constant dense<0.000000e+00> : vector<8xf32>
    %12 = vector.multi_reduction <add>, %11, %cst_7 [1] : vector<8x128xf32> to vector<8xf32>
    %13 = vector.shape_cast %12 : vector<8xf32> to vector<8x1xf32>
    %cst_8 = arith.constant 1.280000e+02 : f32
    %14 = vector.broadcast %cst_8 : f32 to vector<8x1xf32>
    %15 = arith.divf %13, %14 : vector<8x1xf32>
    %16 = arith.mulf %10, %10 : vector<8x1xf32>
    %17 = arith.subf %15, %16 : vector<8x1xf32>
    %18 = vector.broadcast %10 : vector<8x1xf32> to vector<8x128xf32>
    %19 = arith.subf %6, %18 : vector<8x128xf32>
    %cst_9 = arith.constant 9.99999974E-6 : f32
    %20 = vector.broadcast %cst_9 : f32 to vector<8x1xf32>
    %21 = arith.addf %17, %20 : vector<8x1xf32>
    %22 = math.rsqrt %21 : vector<8x1xf32>
    %23 = vector.broadcast %22 : vector<8x1xf32> to vector<8x128xf32>
    %24 = arith.mulf %19, %23 : vector<8x128xf32>
    %c0_10 = arith.constant 0 : index
    %c0_11 = arith.constant 0 : index
    %25 = vector.load %arg4[%c0_10, %c0_11] : memref<1x128xf32, #tpu.memory_space<vmem>>, vector<1x128xf32>
    %26 = vector.broadcast %25 : vector<1x128xf32> to vector<8x128xf32>
    %27 = arith.mulf %24, %26 : vector<8x128xf32>
    %c0_12 = arith.constant 0 : index
    %c0_13 = arith.constant 0 : index
    %28 = vector.load %arg5[%c0_12, %c0_13] : memref<1x128xf32, #tpu.memory_space<vmem>>, vector<1x128xf32>
    %29 = vector.broadcast %28 : vector<1x128xf32> to vector<8x128xf32>
    %30 = arith.addf %27, %29 : vector<8x128xf32>
    %31 = arith.truncf %30 : vector<8x128xf32> to vector<8x128xbf16>
    %c0_14 = arith.constant 0 : index
    %c0_15 = arith.constant 0 : index
    %32 = vector.load %arg6[%c0_14, %c0_15] : memref<128x128xbf16, #tpu.memory_space<vmem>>, vector<128x128xbf16>
    %cst_16 = arith.constant dense<0.000000e+00> : vector<8x128xf32>
    %33 = tpu.matmul %31, %32, %cst_16 {dimension_numbers = #tpu.dot_dimension_numbers<[1], [0], [0], [1], [0, 0, 1, 1], [], []>} : vector<8x128xbf16>, vector<128x128xbf16>, vector<8x128xf32> -> vector<8x128xf32>
    %c0_17 = arith.constant 0 : index
    %c0_18 = arith.constant 0 : index
    %34 = vector.load %arg7[%c0_17, %c0_18] : memref<1x128xf32, #tpu.memory_space<vmem>>, vector<1x128xf32>
    %35 = vector.broadcast %34 : vector<1x128xf32> to vector<8x128xf32>
    %36 = arith.addf %33, %35 : vector<8x128xf32>
    %cst_19 = arith.constant 5.000000e-01 : f32
    %37 = vector.broadcast %cst_19 : f32 to vector<8x128xf32>
    %38 = arith.mulf %37, %36 : vector<8x128xf32>
    %cst_20 = arith.constant 0.707106769 : f32
    %39 = vector.broadcast %cst_20 : f32 to vector<8x128xf32>
    %40 = arith.mulf %36, %39 : vector<8x128xf32>
    %41 = math.erf %40 : vector<8x128xf32>
    %cst_21 = arith.constant 1.000000e+00 : f32
    %42 = vector.broadcast %cst_21 : f32 to vector<8x128xf32>
    %43 = arith.addf %42, %41 : vector<8x128xf32>
    %44 = arith.mulf %38, %43 : vector<8x128xf32>
    %c0_22 = arith.constant 0 : index
    %c0_23 = arith.constant 0 : index
    %45 = vector.load %arg8[%c0_22, %c0_23] : memref<16x128xbf16, #tpu.memory_space<vmem>>, vector<16x128xbf16>
    %46 = arith.truncf %44 : vector<8x128xf32> to vector<8x128xbf16>
    %cst_24 = arith.constant dense<0.000000e+00> : vector<16x8xf32>
    %47 = tpu.matmul %45, %46, %cst_24 {dimension_numbers = #tpu.dot_dimension_numbers<[1], [1], [0], [0], [0, 0, 1, 0], [], []>} : vector<16x128xbf16>, vector<8x128xbf16>, vector<16x8xf32> -> vector<16x8xf32>
    %c0_25 = arith.constant 0 : index
    %c0_26 = arith.constant 0 : index
    %48 = vector.load %arg9[%c0_25, %c0_26] : memref<16x1xf32, #tpu.memory_space<vmem>>, vector<16x1xf32>
    %49 = vector.broadcast %48 : vector<16x1xf32> to vector<16x8xf32>
    %50 = arith.addf %47, %49 : vector<16x8xf32>
    %c0_27 = arith.constant 0 : index
    %c0_28 = arith.constant 0 : index
    %51 = vector.load %arg10[%c0_27, %c0_28] : memref<16x8xf32, #tpu.memory_space<vmem>>, vector<16x8xf32>
    tpu.vector_store %arg10[%c0_27, %c0_28], %50 {strides = array<i32>} : memref<16x8xf32, #tpu.memory_space<vmem>>, vector<16x8xf32>,
    return
  }
  func.func @transform_0(%arg0: i32) -> (i32, i32) {
    %c0_i32 = arith.constant 0 : i32
    %c0_i32_0 = arith.constant 0 : i32
    return %arg0, %c0_i32 : i32, i32
  }
  func.func @transform_1(%arg0: i32) -> (i32, i32) {
    %c0_i32 = arith.constant 0 : i32
    %c0_i32_0 = arith.constant 0 : i32
    %c0_i32_1 = arith.constant 0 : i32
    return %c0_i32, %c0_i32_0 : i32, i32
  }
  func.func @transform_2(%arg0: i32) -> (i32, i32) {
    %c0_i32 = arith.constant 0 : i32
    %c0_i32_0 = arith.constant 0 : i32
    %c0_i32_1 = arith.constant 0 : i32
    return %c0_i32, %c0_i32_0 : i32, i32
  }
  func.func @transform_3(%arg0: i32) -> (i32, i32) {
    %c0_i32 = arith.constant 0 : i32
    %c0_i32_0 = arith.constant 0 : i32
    %c0_i32_1 = arith.constant 0 : i32
    return %c0_i32, %c0_i32_0 : i32, i32
  }
  func.func @transform_4(%arg0: i32) -> (i32, i32) {
    %c0_i32 = arith.constant 0 : i32
    %c0_i32_0 = arith.constant 0 : i32
    %c0_i32_1 = arith.constant 0 : i32
    return %c0_i32, %c0_i32_0 : i32, i32
  }
  func.func @transform_5(%arg0: i32) -> (i32, i32) {
    %c0_i32 = arith.constant 0 : i32
    %c0_i32_0 = arith.constant 0 : i32
    %c0_i32_1 = arith.constant 0 : i32
    return %c0_i32, %c0_i32_0 : i32, i32
  }
  func.func @transform_6(%arg0: i32) -> (i32, i32) {
    %c0_i32 = arith.constant 0 : i32
    %c0_i32_0 = arith.constant 0 : i32
    %c0_i32_1 = arith.constant 0 : i32
    return %c0_i32, %c0_i32_0 : i32, i32
  }
  func.func @transform_7(%arg0: i32) -> (i32, i32) {
    %c0_i32 = arith.constant 0 : i32
    %c0_i32_0 = arith.constant 0 : i32
    %c0_i32_1 = arith.constant 0 : i32
    return %c0_i32, %c0_i32_0 : i32, i32
  }
  func.func @transform_8(%arg0: i32) -> (i32, i32) {
    %c0_i32 = arith.constant 0 : i32
    %c0_i32_0 = arith.constant 0 : i32
    %c0_i32_1 = arith.constant 0 : i32
    return %c0_i32, %c0_i32_0 : i32, i32
  }
  func.func @transform_9(%arg0: i32) -> (i32, i32) {
    %c0_i32 = arith.constant 0 : i32
    %c0_i32_0 = arith.constant 0 : i32
    return %c0_i32, %arg0 : i32, i32
  }
}

</mosaic_0001>

<bundles_post_ra>
// kernel: label_decoder_forward.1
= control target key start
LH: loop header
LB: loop body
LE: loop exit
PB: predicated region body
PF: predicated region fallthrough
CT: control target
= control target key end

     0   :  { %14 = vsyncpa [#allocation3], 0  ;;  %s675_s0 = inlined_call_operand.hbm [shape: f32[8,64], index: 0, kind: input, shape index: {}]   ;;  %s676_s1 = inlined_call_operand.vmem [shape: bf16[64,128], index: 1, kind: input, shape index: {}]   ;;  %s677_s2 = inlined_call_operand.vmem [shape: f32[1,128], index: 2, kind: input, shape index: {}]   ;;  %s678_s3 = inlined_call_operand.vmem [shape: f32[1,128], index: 3, kind: input, shape index: {}]   ;;  %s679_s4 = inlined_call_operand.vmem [shape: f32[1,128], index: 4, kind: input, shape index: {}]   ;;  %s680_s5 = inlined_call_operand.hbm [shape: bf16[128,128], index: 5, kind: input, shape index: {}]   ;;  %s681_s6 = inlined_call_operand.hbm [shape: f32[1,128], index: 6, kind: input, shape index: {}]   ;;  %s682_s7 = inlined_call_operand.vmem [shape: bf16[16,128], index: 7, kind: input, shape index: {}]   ;;  %s683_s8 = inlined_call_operand.vmem [shape: f32[16,1], index: 8, kind: input, shape index: {}]   ;;  %s684_s9 = inlined_call_operand.vmem [shape: f32[16,8], index: 9, kind: output, shape index: {}]  }
   0x1   :  { %15 = vsyncpa [#allocation5], 0  ;;  %s542_s30 = smov [#allocation4]   ;;  %s472_s13 = scalar_lea.hbm %s680_s5, 1024 }
   0x2   :  { %s39_s10 = sshll.u32 %s542_s30, 4  ;;  %p473_p0 = scmp.ne.s32.totalorder %s680_s5, %s472_s13  ;;  %s40_s10 = int_to_ptr.vmem [resolvable:$true] %s39_s10 }
   0x3   :  { %p476_p1 = scmp.lt.u32.totalorder %s472_s13, %s680_s5 }
   0x5   :  { %p478_p2 = pnand %p476_p1, %p473_p0 }
   0x7   :  { %481 = shalt.err (!%p478_p2)
}
   0x8   :  { %s482_s18 = scalar_lea.vmem %s40_s10, 1024  ;;  %p487_p4 = scmp.lt.s32.totalorder %s40_s10, %s40_s10 }
   0x9   :  { %p483_p3 = scmp.ne.s32.totalorder %s40_s10, %s482_s18  ;;  %p488_p5 = scmp.lt.s32.totalorder %s482_s18, %s482_s18 }
   0xb   :  { %p489_p6 = por %p488_p5, %p487_p4 }
   0xd   :  { %p490_p7 = pnand %p489_p6, %p483_p3 }
   0xf   :  { %493 = shalt.err (!%p490_p7)
}
  0x10   :  { %s543_s19 = smov 64   ;;  %s544_s20 = smov 4  }
  0x11   :  { %45 = dma.hbm_to_vmem [thread:$0]  %s680_s5, 1024, %s40_s10, [#allocation5], %s543_s19, %s543_s19, %s544_s20  }
  0x12   :  { %s545_s23 = smov [#allocation2]   ;;  %s546_s25 = smov [#allocation6]  }
  0x13   :  { %s22_s24 = sshll.u32 %s545_s23, 4  ;;  %s52_s26 = sshll.u32 %s546_s25, 4  ;;  %s23_s24 = int_to_ptr.vmem [resolvable:$true] %s22_s24  ;;  %s53_s26 = int_to_ptr.vmem [resolvable:$true] %s52_s26 }
  0x14   :  { %s494_s29 = scalar_lea.hbm %s675_s0, 128 }
  0x15   :  { %p495_p8 = scmp.ne.s32.totalorder %s675_s0, %s494_s29  ;;  %p498_p9 = scmp.lt.u32.totalorder %s494_s29, %s675_s0 }
  0x17   :  { %p500_p10 = pnand %p498_p9, %p495_p8 }
  0x19   :  { %503 = shalt.err (!%p500_p10)
}
  0x1a   :  { %s504_s5 = scalar_lea.vmem %s23_s24, 128  ;;  %p509_p12 = scmp.lt.s32.totalorder %s23_s24, %s23_s24 }
  0x1b   :  { %p505_p11 = scmp.ne.s32.totalorder %s23_s24, %s504_s5  ;;  %p510_p13 = scmp.lt.s32.totalorder %s504_s5, %s504_s5 }
  0x1d   :  { %p511_p0 = por %p510_p13, %p509_p12 }
  0x1f   :  { %p512_p1 = pnand %p511_p0, %p505_p11 }
  0x21   :  { %515 = shalt.err (!%p512_p1)
}
  0x22   :  { %25 = dma.hbm_to_vmem [thread:$0]  %s675_s0, 128, %s23_s24, [#allocation3]  }
  0x23   :  { %s516_s17 = scalar_lea.hbm %s681_s6, 16 }
  0x24   :  { %p517_p2 = scmp.ne.s32.totalorder %s681_s6, %s516_s17  ;;  %p520_p3 = scmp.lt.u32.totalorder %s516_s17, %s681_s6 }
  0x26   :  { %p522_p4 = pnand %p520_p3, %p517_p2 }
  0x28   :  { %525 = shalt.err (!%p522_p4)
}
  0x29   :  { %s526_s22 = scalar_lea.vmem %s53_s26, 16  ;;  %s530_s23 = scalar_lea.vmem %s53_s26, 32 }
  0x2a   :  { %p527_p5 = scmp.ne.s32.totalorder %s53_s26, %s526_s22  ;;  %p531_p6 = scmp.lt.s32.totalorder %s53_s26, %s53_s26 }
  0x2b   :  { %p532_p7 = scmp.lt.s32.totalorder %s530_s23, %s526_s22 }
  0x2d   :  { %p533_p8 = por %p532_p7, %p531_p6 }
  0x2f   :  { %p534_p9 = pnand %p533_p8, %p527_p5 }
  0x31   :  { %537 = shalt.err (!%p534_p9)
}
  0x32   :  { %55 = dma.hbm_to_vmem [thread:$0]  %s681_s6, 16, %s53_s26, [#allocation5]  }
  0x33   :  { %538 = dma.done.wait [#allocation3], 128  }
  0x34   :  { %539 = vsyncadd [#allocation3], 4294967168 }
  0x35   :  { %540 = dma.done.wait [#allocation5], 1040  }
  0x36   :  { %541 = vsyncadd [#allocation5], 4294966256  ;;  %v547_v0 = vmov 0.0   ;;  %vm548_vm0 = vmmov 0   ;;  %v455_v1 = vld [vmem:[%s676_s1] sm:$0xff]   ;;  %v456_v2 = vld [vmem:[%s676_s1 + $0x8] sm:$0xff]  }
  0x37   :  { %407 = vmatprep.subr.bf16.mxu0 %v547_v0  ;;  %415 = vmatprep.mubr.msk.bf16.mxu0 %vm548_vm0, %v547_v0  ;;  %v457_v3 = vld [vmem:[%s676_s1 + $0x10] sm:$0xff]   ;;  %v458_v4 = vld [vmem:[%s676_s1 + $0x18] sm:$0xff]   ;;  %v70_v5 = vld [vmem:[#allocation2] sm:$0xff]  ;;  %vm111_vm1 = vcmask 523264   ;;  %v549_v38 = vmov 0   ;;  %vm364_vm2 = vcmask 64512  }
  0x38   :  { %419 = vmatprep.subr.bf16.mxu1 %v547_v0  ;;  %435 = vmatprep.mubr.msk.bf16.mxu1 %vm548_vm0, %v547_v0  ;;  %v71_v6 = vpack.c.bf16 %v70_v5, %v70_v5  ;;  %v459_v7 = vld [vmem:[#allocation4] sm:$0xff]   ;;  %v373_v8 = vld [vmem:[%s677_s2] ss:$0 sm:$0xff]  ;;  %v460_v15 = vld [vmem:[#allocation4 + $0x8] sm:$0xff]  }
  0x39   :  { %408 = vmatpush3.bf16.msra.mxu0 %v455_v1  ;;  %420 = vmatpush3.bf16.msra.mxu1 %v459_v7  ;;  %v461_v16 = vld [vmem:[#allocation4 + $0x10] sm:$0xff]   ;;  %v462_v17 = vld [vmem:[#allocation4 + $0x18] sm:$0xff]   ;;  %v463_v18 = vld [vmem:[#allocation4 + $0x20] sm:$0xff]  }
  0x3a   :  { %409 = vmatprep.subr.bf16.mxu0 %v547_v0  ;;  %421 = vmatprep.subr.bf16.mxu1 %v547_v0  ;;  %v464_v19 = vld [vmem:[#allocation4 + $0x28] sm:$0xff]   ;;  %v465_v20 = vld [vmem:[#allocation4 + $0x30] sm:$0xff]   ;;  %v466_v21 = vld [vmem:[#allocation4 + $0x38] sm:$0xff]  }
  0x3b   :  { %v379_v31 = vld [vmem:[%s678_s3] ss:$0 sm:$0xff]  ;;  %453 = vset.pattern.permute.xlu1 %v549_v38  ;;  %454 = vset.pattern.permute.xlu0 %v549_v38  ;;  %v306_v39 = vld [vmem:[%s683_s8 + $0x8] sm:$0xff] }
  0x3c   :  { %v380_v33 = vld [vmem:[%s679_s4] ss:$0 sm:$0xff]  ;;  %v381_v40 = vld [vmem:[#allocation6] ss:$0 sm:$0xff] }
  0x3d   :  { %410 = vmatpush3.bf16.msra.mxu0 %v456_v2  ;;  %422 = vmatpush3.bf16.msra.mxu1 %v460_v15  ;;  %v305_v37 = vld [vmem:[%s683_s8] sm:$0xff] }
  0x3e   :  { %411 = vmatprep.subr.bf16.mxu0 %v547_v0  ;;  %423 = vmatprep.subr.bf16.mxu1 %v547_v0  ;;  %v467_v52 = vld [vmem:[%s682_s7] sm:$0xff]  }
  0x3f   :  { %309 = vperm.xlu1 %453, %v305_v37  }
  0x41   :  { %412 = vmatpush3.bf16.msra.mxu0 %v457_v3  ;;  %424 = vmatpush3.bf16.msra.mxu1 %v461_v16 }
  0x42   :  { %413 = vmatprep.subr.bf16.mxu0 %v547_v0  ;;  %425 = vmatprep.subr.bf16.mxu1 %v547_v0 }
  0x43   :  { %314 = vperm.xlu1 %453, %v306_v39  }
  0x45   :  { %414 = vmatpush3.bf16.msra.mxu0 %v458_v4  ;;  %426 = vmatpush3.bf16.msra.mxu1 %v462_v17 }
  0x46   :  { %439 = vmatprep.subr.bf16.mxu0 %v547_v0  ;;  %427 = vmatprep.subr.bf16.mxu1 %v547_v0 }
  0x48   :  { %416 = vmatmul.mubr.msk.bf16.vlgmr.msra.gmra.mrb[0].mxu0 %vm111_vm1, %v71_v6 }
  0x49   :  { %441 = vmatprep.mubr.msk.bf16.mxu0 %vm548_vm0, %v547_v0  ;;  %428 = vmatpush3.bf16.msra.mxu1 %v463_v18 }
  0x4a   :  { %429 = vmatprep.subr.bf16.mxu1 %v547_v0 }
  0x4d   :  { %430 = vmatpush3.bf16.msra.mxu1 %v464_v19 }
  0x4e   :  { %431 = vmatprep.subr.bf16.mxu1 %v547_v0 }
  0x51   :  { %432 = vmatpush3.bf16.msra.mxu1 %v465_v20 }
  0x52   :  { %433 = vmatprep.subr.bf16.mxu1 %v547_v0 }
  0x55   :  { %434 = vmatpush3.bf16.msra.mxu1 %v466_v21 }
  0xbe   :  { %v310_v53 = vpop.permute.xlu1 %309 }
  0xc2   :  { %v315_v57 = vpop.permute.xlu1 %314 }
 0x11b   :  { %v149_v9 = vpop.f32.mrb[0].mxu0 }
 0x11c   :  { %v150_v10 = vadd.f32 %v373_v8, %v149_v9  ;;  %v417_v11 = vpop.f32.mrb[1].mxu0 }
 0x11d   :  { %v152_v12 = vpop.f32.mrb[2].mxu0 }
 0x11e   :  { %155 = vadd.xlane.f32.xlu0 %v150_v10  ;;  %v418_v13 = vpop.f32.mrb[3].mxu0  ;;  %v159_v14 = vmul.f32 %v150_v10, %v150_v10 }
 0x122   :  { %160 = vadd.xlane.f32.xlu0 %v159_v14 }
 0x1ab   :  { %v156_v22 = vpop.xlane.xlu0 %155 }
 0x1ac   :  { %v158_v23 = vmul.f32 0.0078125, %v156_v22 }
 0x1ae   :  { %v163_v25 = vmul.f32 %v158_v23, %v158_v23  ;;  %v165_v29 = vsub.f32 %v150_v10, %v158_v23 }
 0x1af   :  { %v161_v24 = vpop.xlane.xlu0 %160 }
 0x1b0   :  { %v162_v26 = vmul.f32 0.0078125, %v161_v24 }
 0x1b2   :  { %v164_v27 = vsub.f32 %v162_v26, %v163_v25 }
 0x1b4   :  { %v166_v28 = vadd.f32 1e-05, %v164_v27 }
 0x1b6   :  { %468 = vrsqrt.f32 %v166_v28 }
 0x1c0   :  { %v469_v30 = vpop.eup %468 }
 0x1c1   :  { %v168_v32 = vmul.f32 %v469_v30, %v165_v29 }
 0x1c3   :  { %v176_v34 = vmul.f32 %v379_v31, %v168_v32 }
 0x1c5   :  { %v184_v35 = vadd.f32 %v380_v33, %v176_v34 }
 0x1c7   :  { %v185_v36 = vpack.c.bf16 %v184_v35, %v184_v35 }
 0x1c9   :  { %436 = vmatmul.mubr.bf16.vlgmr.msra.gmra.mrb[0].mxu1 %v185_v36 }
 0x29c   :  { %v291_v41 = vpop.f32.mrb[0].mxu1 }
 0x29d   :  { %v292_v42 = vadd.f32 %v381_v40, %v291_v41  ;;  %v437_v43 = vpop.f32.mrb[1].mxu1 }
 0x29e   :  { %v294_v44 = vpop.f32.mrb[2].mxu1 }
 0x29f   :  { %v298_v45 = vmul.f32 0.70710677, %v292_v42  ;;  %v438_v46 = vpop.f32.mrb[3].mxu1  ;;  %v297_v48 = vmul.f32 0.5, %v292_v42 }
 0x2a1   :  { %470 = verf.f32 %v298_v45 }
 0x2ab   :  { %v471_v47 = vpop.eup %470 }
 0x2ac   :  { %v300_v49 = vadd.f32 1.0, %v471_v47 }
 0x2ae   :  { %v301_v50 = vmul.f32 %v300_v49, %v297_v48 }
 0x2b0   :  { %v304_v51 = vpack.c.bf16 %v301_v50, %v301_v50 }
 0x2b2   :  { %440 = vmatpush3.bf16.xpose.msra.mxu0 %v304_v51 }
 0x2b9   :  { %442 = vmatmul.mubr.bf16.vlgmr.msra.gmra.mrb[4].mxu0 %v467_v52 }
 0x38c   :  { %v357_v54 = vpop.f32.mrb[4].mxu0 }
 0x38d   :  { %v358_v55 = vadd.f32 %v357_v54, %v310_v53  ;;  %v443_v56 = vpop.f32.mrb[5].mxu0 }
 0x38e   :  { %v360_v58 = vpop.f32.mrb[6].mxu0 }
 0x38f   :  { %365 = vst.msk [vmem:[%s684_s9] sm:$0xff] %vm364_vm2, %v358_v55  ;;  %v361_v59 = vadd.f32 %v360_v58, %v315_v57  ;;  %v444_v60 = vpop.f32.mrb[7].mxu0 }
 0x391   :  { %366 = vst.msk [vmem:[%s684_s9 + $0x8] sm:$0xff] %vm364_vm2, %v361_v59 }
 0x392   :  { %371 = vsyncpa [#allocation3], 1 }
 0x393   :  { %372 = vsyncpa [#allocation5], 1 }

</bundles_post_ra>
